<compile_context>
chip_gen: v5e
topology: v5e:2x2
jax: 0.10.0
libtpu: 0.0.40
codegen_flags: <defaults>
</compile_context>

<pallas_src>
import jax
import jax.numpy as jnp
from jax import lax
from jax.experimental import pallas as pl
from jax.experimental.pallas import tpu as pltpu

LANE = 128
VMEM_BUDGET = 24 << 20   # per-kernel working-set budget used to pick TM (fits every gen)
VMEM_LIMIT = 48 << 20    # explicit scoped-VMEM limit (safe on v7x's 64 MiB physical VMEM)


def _round_up(x, m):
    return -(-x // m) * m


def _pick_tile_m(m_rows, k_pad, c_pad, budget=VMEM_BUDGET):
    """Largest TM in {1024,512,256,128} whose double-buffered tiles fit the budget
    without over-padding tiny problems."""
    m_cap = max(128, _round_up(m_rows, 128))
    for tm in (1024, 512, 256, 128):
        if tm > m_cap:
            continue
        need = (2 * tm * k_pad * 2        # double-buffered bf16 patch tiles
                + 2 * tm * c_pad * 4      # double-buffered f32 conv-out tiles
                + k_pad * c_pad * 2       # resident bf16 weights
                + 4 * 8 * c_pad * 4)      # partial-stat tiles
        if need <= budget:
            return tm
    return 128


# ---------------- Pallas kernels (hot path) ----------------

def conv_stats_kernel(p_ref, w_ref, y_ref, psum_ref, pssq_ref):
    """Matmul conv (im2col, bf16 inputs, f32 accumulation) + per-tile partial
    sum / sum-of-squares of X@W (for training-mode BatchNorm statistics).
    Padded rows/cols are zero, so they contribute nothing to the partials."""
    y = jnp.dot(p_ref[...], w_ref[...], preferred_element_type=jnp.float32)
    y_ref[...] = y
    s = jnp.sum(y, axis=0, keepdims=True)        # (1, C_pad)
    q = jnp.sum(y * y, axis=0, keepdims=True)    # (1, C_pad)
    # Write the per-tile partial broadcast across 8 sublanes (wrapper divides by 8).
    psum_ref[...] = jnp.broadcast_to(s, psum_ref.shape)
    pssq_ref[...] = jnp.broadcast_to(q, pssq_ref.shape)


def bn_relu_kernel(y_ref, scale_ref, shift_ref, o_ref):
    """Per-channel affine (folded BatchNorm, bias already folded into shift) + ReLU."""
    o_ref[...] = jnp.maximum(y_ref[...] * scale_ref[...] + shift_ref[...], 0.0)


# ---------------- plain-JAX glue ----------------

def _im2col_3d(x_ndhwc, k, s, p):
    # TODO(synk): longer term, avoid materializing the kd*kh*kw-times-larger im2col
    # array in HBM by adding a tap grid axis with an index_map on the padded NDHWC input.
    kd, kh, kw = k
    sd, sh, sw = s
    pd, ph, pw = p
    x = jnp.pad(x_ndhwc, ((0, 0), (pd, pd), (ph, ph), (pw, pw), (0, 0)))
    N, D, H, W, C = x.shape
    Do = (D - kd) // sd + 1
    Ho = (H - kh) // sh + 1
    Wo = (W - kw) // sw + 1
    cols = []
    for dz in range(kd):
        for dy in range(kh):
            for dx in range(kw):
                sl = x[:,
                       dz:dz + (Do - 1) * sd + 1:sd,
                       dy:dy + (Ho - 1) * sh + 1:sh,
                       dx:dx + (Wo - 1) * sw + 1:sw, :]
                cols.append(sl)
    patches = jnp.stack(cols, axis=-2)  # (N, Do, Ho, Wo, kd*kh*kw, C)
    return patches.reshape(N * Do * Ho * Wo, kd * kh * kw * C), (N, Do, Ho, Wo)


def conv_bn_relu(x, w, b, gamma, beta, stride=(1, 1, 1), padding=(0, 0, 0), eps=1e-5):
    """x: (N, Cin, D, H, W);  w: (Cout, Cin, kd, kh, kw);  b/gamma/beta: (Cout,)."""
    N, Cin, D, H, W = x.shape
    Cout = w.shape[0]
    kd, kh, kw = w.shape[2:]

    x_ndhwc = jnp.transpose(x, (0, 2, 3, 4, 1))
    patches, (N, Do, Ho, Wo) = _im2col_3d(x_ndhwc, (kd, kh, kw), stride, padding)
    M, K = patches.shape

    K_pad = _round_up(K, LANE)
    C_pad = _round_up(Cout, LANE)
    TM = _pick_tile_m(M, K_pad, C_pad)
    M_pad = _round_up(M, TM)
    nt = M_pad // TM

    patches_p = jnp.pad(patches, ((0, M_pad - M), (0, K_pad - K))).astype(jnp.bfloat16)
    wmat = jnp.transpose(w, (2, 3, 4, 1, 0)).reshape(K, Cout)
    wmat_p = jnp.pad(wmat, ((0, K_pad - K), (0, C_pad - Cout))).astype(jnp.bfloat16)

    grid = (nt,)
    cparams = pltpu.CompilerParams(dimension_semantics=("parallel",),
                                   vmem_limit_bytes=VMEM_LIMIT)

    # Pass 1: conv matmul + per-tile BN partial statistics.
    conv_out, psum, pssq = pl.pallas_call(
        conv_stats_kernel,
        out_shape=(jax.ShapeDtypeStruct((M_pad, C_pad), jnp.float32),
                   jax.ShapeDtypeStruct((nt * 8, C_pad), jnp.float32),
                   jax.ShapeDtypeStruct((nt * 8, C_pad), jnp.float32)),
        grid_spec=pltpu.PrefetchScalarGridSpec(
            num_scalar_prefetch=0, grid=grid,
            in_specs=[pl.BlockSpec((TM, K_pad), lambda i: (i, 0)),
                      pl.BlockSpec((K_pad, C_pad), lambda i: (0, 0))],
            out_specs=[pl.BlockSpec((TM, C_pad), lambda i: (i, 0)),
                       pl.BlockSpec((8, C_pad), lambda i: (i, 0)),
                       pl.BlockSpec((8, C_pad), lambda i: (i, 0))]),
        compiler_params=cparams,
    )(patches_p, wmat_p)

    # Training-mode BatchNorm statistics (biased variance, like PyTorch normalization).
    # Partial sums are replicated across 8 sublanes -> divide by 8; padded rows are zero.
    inv = 1.0 / (8.0 * M)
    mean = jnp.sum(psum, axis=0, keepdims=True) * inv          # E[X@W]   (1, C_pad)
    msq = jnp.sum(pssq, axis=0, keepdims=True) * inv           # E[(X@W)^2]
    var = jnp.maximum(msq - mean * mean, 0.0)                  # clamp cancellation

    gamma_p = jnp.pad(gamma.astype(jnp.float32), (0, C_pad - Cout)).reshape(1, C_pad)
    beta_p = jnp.pad(beta.astype(jnp.float32), (0, C_pad - Cout)).reshape(1, C_pad)
    scale = gamma_p * lax.rsqrt(var + eps)
    # The conv bias cancels in training-mode BN of the forward pass:
    # (XW + b) - mean(XW + b) == XW - mean(XW), so it is not needed in the hot loop.
    shift = beta_p - mean * scale
    # TODO(synk): running_mean/running_var momentum updates (where mean(XW)+b / var
    # would be used) are training-state side effects not produced by this forward kernel.
    del b

    # Pass 2: folded BN affine + ReLU on lane-dense (TM, C_pad) tiles.
    out = pl.pallas_call(
        bn_relu_kernel,
        out_shape=jax.ShapeDtypeStruct((M_pad, C_pad), jnp.float32),
        grid_spec=pltpu.PrefetchScalarGridSpec(
            num_scalar_prefetch=0, grid=grid,
            in_specs=[pl.BlockSpec((TM, C_pad), lambda i: (i, 0)),
                      pl.BlockSpec((1, C_pad), lambda i: (0, 0)),
                      pl.BlockSpec((1, C_pad), lambda i: (0, 0))],
            out_specs=pl.BlockSpec((TM, C_pad), lambda i: (i, 0))),
        compiler_params=cparams,
    )(conv_out, scale, shift)

    out = out[:M, :Cout].reshape(N, Do, Ho, Wo, Cout)
    return jnp.transpose(out, (0, 4, 1, 2, 3))  # back to NCDHW (PyTorch layout)


# ---------------- pure-JAX reference for correctness ----------------

def ref_forward(x, w, b, gamma, beta, stride, padding, eps=1e-5):
    dn = lax.conv_dimension_numbers(x.shape, w.shape, ('NCDHW', 'OIDHW', 'NCDHW'))
    y = lax.conv_general_dilated(x, w, window_strides=stride,
                                 padding=[(p, p) for p in padding],
                                 dimension_numbers=dn)
    y = y + b.reshape(1, -1, 1, 1, 1)
    mean = jnp.mean(y, axis=(0, 2, 3, 4), keepdims=True)
    var = jnp.mean((y - mean) ** 2, axis=(0, 2, 3, 4), keepdims=True)
    yhat = (y - mean) / jnp.sqrt(var + eps)
    y = gamma.reshape(1, -1, 1, 1, 1) * yhat + beta.reshape(1, -1, 1, 1, 1)
    return jnp.maximum(y, 0.0)


if __name__ == "__main__":
    key = jax.random.PRNGKey(0)
    k1, k2, k3, k4, k5 = jax.random.split(key, 5)

    # ConvBNReLU(cin=4, cout=8, k=3, s=(1,1,1), p=0)
    N, Cin, D, H, W = 2, 4, 8, 8, 8
    Cout, ksz = 8, 3
    stride, padding = (1, 1, 1), (0, 0, 0)

    x = jax.random.normal(k1, (N, Cin, D, H, W), jnp.float32)
    w = 0.1 * jax.random.normal(k2, (Cout, Cin, ksz, ksz, ksz), jnp.float32)
    b = 0.1 * jax.random.normal(k3, (Cout,), jnp.float32)
    gamma = 1.0 + 0.1 * jax.random.normal(k4, (Cout,), jnp.float32)
    beta = 0.1 * jax.random.normal(k5, (Cout,), jnp.float32)

    out = conv_bn_relu(x, w, b, gamma, beta, stride, padding)
    out = jax.block_until_ready(out)

    ref = ref_forward(x, w, b, gamma, beta, stride, padding)
    assert out.shape == ref.shape, (out.shape, ref.shape)
    # bf16 MXU inputs (f32 accumulation) -> slightly looser tolerance than pure f32.
    max_err = float(jnp.max(jnp.abs(out - ref)))
    assert max_err < 5e-2, f"max abs error too large: {max_err}"

    print("KERNEL_OK")
</pallas_src>

<mosaic_0001>
module attributes {stable_mosaic.version = 11 : i64} {
  func.func @conv_stats_kernel(%arg0: i32, %arg1: memref<512x128xbf16, #tpu.memory_space<vmem>>, %arg2: memref<128x128xbf16, #tpu.memory_space<vmem>>, %arg3: memref<512x128xf32, #tpu.memory_space<vmem>>, %arg4: memref<8x128xf32, #tpu.memory_space<vmem>>, %arg5: memref<8x128xf32, #tpu.memory_space<vmem>>) attributes {dimension_semantics = [#tpu.dimension_semantics<parallel>], iteration_bounds = array<i64: 1>, scalar_prefetch = 0 : i64, scratch_operands = 0 : i64, tpu.core_type = #tpu.core_type<tc>, window_params = [{transform_indices = @transform_0, window_bounds = array<i64: 512, 128>}, {pipeline_mode = #tpu.pipeline_mode<synchronous>, transform_indices = @transform_1, window_bounds = array<i64: 128, 128>}, {transform_indices = @transform_2, window_bounds = array<i64: 512, 128>}, {transform_indices = @transform_3, window_bounds = array<i64: 8, 128>}, {transform_indices = @transform_4, window_bounds = array<i64: 8, 128>}]} {
    %c0 = arith.constant 0 : index
    %c0_0 = arith.constant 0 : index
    %0 = vector.load %arg1[%c0, %c0_0] : memref<512x128xbf16, #tpu.memory_space<vmem>>, vector<512x128xbf16>
    %c0_1 = arith.constant 0 : index
    %c0_2 = arith.constant 0 : index
    %1 = vector.load %arg2[%c0_1, %c0_2] : memref<128x128xbf16, #tpu.memory_space<vmem>>, vector<128x128xbf16>
    %cst = arith.constant dense<0.000000e+00> : vector<512x128xf32>
    %2 = tpu.matmul %0, %1, %cst {dimension_numbers = #tpu.dot_dimension_numbers<[1], [0], [0], [1], [0, 0, 1, 1], [], []>} : vector<512x128xbf16>, vector<128x128xbf16>, vector<512x128xf32> -> vector<512x128xf32>
    %c0_3 = arith.constant 0 : index
    %c0_4 = arith.constant 0 : index
    %3 = vector.load %arg3[%c0_3, %c0_4] : memref<512x128xf32, #tpu.memory_space<vmem>>, vector<512x128xf32>
    tpu.vector_store %arg3[%c0_3, %c0_4], %2 {strides = array<i32>} : memref<512x128xf32, #tpu.memory_space<vmem>>, vector<512x128xf32>,
    %cst_5 = arith.constant dense<0.000000e+00> : vector<128xf32>
    %4 = vector.multi_reduction <add>, %2, %cst_5 [0] : vector<512x128xf32> to vector<128xf32>
    %5 = vector.shape_cast %4 : vector<128xf32> to vector<1x128xf32>
    %6 = arith.mulf %2, %2 : vector<512x128xf32>
    %cst_6 = arith.constant dense<0.000000e+00> : vector<128xf32>
    %7 = vector.multi_reduction <add>, %6, %cst_6 [0] : vector<512x128xf32> to vector<128xf32>
    %8 = vector.shape_cast %7 : vector<128xf32> to vector<1x128xf32>
    %9 = vector.shape_cast %5 : vector<1x128xf32> to vector<1x128xf32>
    %10 = vector.broadcast %9 : vector<1x128xf32> to vector<8x128xf32>
    %c0_7 = arith.constant 0 : index
    %c0_8 = arith.constant 0 : index
    %11 = vector.load %arg4[%c0_7, %c0_8] : memref<8x128xf32, #tpu.memory_space<vmem>>, vector<8x128xf32>
    tpu.vector_store %arg4[%c0_7, %c0_8], %10 {strides = array<i32>} : memref<8x128xf32, #tpu.memory_space<vmem>>, vector<8x128xf32>,
    %12 = vector.shape_cast %8 : vector<1x128xf32> to vector<1x128xf32>
    %13 = vector.broadcast %12 : vector<1x128xf32> to vector<8x128xf32>
    %c0_9 = arith.constant 0 : index
    %c0_10 = arith.constant 0 : index
    %14 = vector.load %arg5[%c0_9, %c0_10] : memref<8x128xf32, #tpu.memory_space<vmem>>, vector<8x128xf32>
    tpu.vector_store %arg5[%c0_9, %c0_10], %13 {strides = array<i32>} : memref<8x128xf32, #tpu.memory_space<vmem>>, vector<8x128xf32>,
    return
  }
  func.func @transform_0(%arg0: i32) -> (i32, i32) {
    %c0_i32 = arith.constant 0 : i32
    %c0_i32_0 = arith.constant 0 : i32
    return %arg0, %c0_i32 : i32, i32
  }
  func.func @transform_1(%arg0: i32) -> (i32, i32) {
    %c0_i32 = arith.constant 0 : i32
    %c0_i32_0 = arith.constant 0 : i32
    %c0_i32_1 = arith.constant 0 : i32
    return %c0_i32, %c0_i32_0 : i32, i32
  }
  func.func @transform_2(%arg0: i32) -> (i32, i32) {
    %c0_i32 = arith.constant 0 : i32
    %c0_i32_0 = arith.constant 0 : i32
    return %arg0, %c0_i32 : i32, i32
  }
  func.func @transform_3(%arg0: i32) -> (i32, i32) {
    %c0_i32 = arith.constant 0 : i32
    %c0_i32_0 = arith.constant 0 : i32
    return %arg0, %c0_i32 : i32, i32
  }
  func.func @transform_4(%arg0: i32) -> (i32, i32) {
    %c0_i32 = arith.constant 0 : i32
    %c0_i32_0 = arith.constant 0 : i32
    return %arg0, %c0_i32 : i32, i32
  }
}

</mosaic_0001>

<bundles_post_ra>
// kernel: tpu_custom_call.1
= control target key start
LH: loop header
LB: loop body
LE: loop exit
PB: predicated region body
PF: predicated region fallthrough
CT: control target
= control target key end

     0   :  { %10 = vsyncpa [#allocation3], 0  ;;  %s1560_s0 = inlined_call_operand.hbm [shape: bf16[512,128], index: 0, kind: input, shape index: {}]   ;;  %s1561_s1 = inlined_call_operand.hbm [shape: bf16[128,128], index: 1, kind: input, shape index: {}]   ;;  %s1562_s2 = inlined_call_operand.hbm [shape: f32[512,128], index: 2, kind: output, shape index: {0}]   ;;  %s1563_s3 = inlined_call_operand.hbm [shape: f32[8,128], index: 3, kind: output, shape index: {1}]   ;;  %s1564_s4 = inlined_call_operand.hbm [shape: f32[8,128], index: 4, kind: output, shape index: {2}]  }
   0x1   :  { %11 = vsyncpa [#allocation6], 0 }
   0x2   :  { %12 = vsyncpa [#allocation4], 0 }
   0x3   :  { %13 = vsyncpa [#allocation9], 0  ;;  %s18_s17 = sshll.u32 %s1560_s0, 4  ;;  %s1217_s18 = smov [#allocation2]   ;;  %s19_s17 = int_to_ptr.hbm [resolvable:$true] %s18_s17 }
   0x4   :  { %s20_s19 = sshll.u32 %s1217_s18, 4  ;;  %s31_s22 = sshll.u32 %s1561_s1, 4  ;;  %s21_s19 = int_to_ptr.vmem [resolvable:$true] %s20_s19  ;;  %s32_s22 = int_to_ptr.hbm [resolvable:$true] %s31_s22 }
   0x5   :  { %s1218_s23 = smov 64   ;;  %s1219_s24 = smov 4  }
   0x6   :  { %26 = dma.hbm_to_vmem [thread:$0]  %s19_s17, 4096, %s21_s19, [#allocation3], %s1218_s23, %s1218_s23, %s1219_s24  }
   0x7   :  { %s1220_s25 = smov [#allocation5]  }
   0x8   :  { %s33_s26 = sshll.u32 %s1220_s25, 4  ;;  %s34_s26 = int_to_ptr.vmem [resolvable:$true] %s33_s26 }
   0x9   :  { %39 = dma.hbm_to_vmem [thread:$0]  %s32_s22, 1024, %s34_s26, [#allocation6], %s1218_s23, %s1218_s23, %s1219_s24  }
   0xa   :  { %1209 = dma.done.wait [#allocation3], 4096  }
   0xb   :  { %1210 = vsyncadd [#allocation3], 4294963200 }
   0xc   :  { %1211 = dma.done.wait [#allocation6], 1024  }
   0xd   :  { %1212 = vsyncadd [#allocation6], 4294966272  ;;  %v1055_v0 = vld [vmem:[#allocation5 + $0x38] sm:$0xff]  ;;  %v1054_v1 = vld [vmem:[#allocation5 + $0x30] sm:$0xff]  ;;  %s1221_s0 = smov [#allocation7]   ;;  %s811_s29 = sshll.u32 %s1562_s2, 4  ;;  %s812_s29 = int_to_ptr.hbm [resolvable:$true] %s811_s29 }
   0xe   :  { %368 = vmatpush.bf16.msra.mxu0 %v1055_v0  ;;  %1056 = vmatpush.bf16.msra.mxu1 %v1055_v0  ;;  %v1053_v2 = vld [vmem:[#allocation5 + $0x28] sm:$0xff]  ;;  %v1052_v3 = vld [vmem:[#allocation5 + $0x20] sm:$0xff]  ;;  %v1051_v4 = vld [vmem:[#allocation5 + $0x18] sm:$0xff]  ;;  %s809_s1 = sshll.u32 %s1221_s0, 4  ;;  %s1222_s2 = smov 128   ;;  %s810_s1 = int_to_ptr.vmem [resolvable:$true] %s809_s1 }
   0xf   :  { %1057 = vmatpush.bf16.msra.mxu2 %v1055_v0  ;;  %1058 = vmatpush.bf16.msra.mxu3 %v1055_v0  ;;  %v1050_v5 = vld [vmem:[#allocation5 + $0x10] sm:$0xff]  ;;  %v1049_v6 = vld [vmem:[#allocation5 + $0x8] sm:$0xff]  ;;  %v1048_v7 = vld [vmem:[#allocation5] sm:$0xff]  ;;  %s1223_s30 = smov 8   ;;  %s1224_s5 = smov [#allocation8]  }
  0x10   :  { %v1016_v8 = vld [vmem:[#allocation2] sm:$0xff]  ;;  %v1017_v10 = vld [vmem:[#allocation2 + $0x8] sm:$0xff]  ;;  %v1018_v13 = vld [vmem:[#allocation2 + $0x10] sm:$0xff]  ;;  %s823_s6 = sshll.u32 %s1224_s5, 4  ;;  %s825_s9 = sshll.u32 %s1563_s3, 4  ;;  %s824_s6 = int_to_ptr.vmem [resolvable:$true] %s823_s6  ;;  %s826_s9 = int_to_ptr.hbm [resolvable:$true] %s825_s9 }
  0x11   :  { %v1024_v9 = vld [vmem:[#allocation2 + $0x40] sm:$0xff]  ;;  %v1025_v11 = vld [vmem:[#allocation2 + $0x48] sm:$0xff]  ;;  %v1026_v14 = vld [vmem:[#allocation2 + $0x50] sm:$0xff]  ;;  %s1225_s10 = smov [#allocation10]   ;;  %s836_s14 = sshll.u32 %s1564_s4, 4  ;;  %s837_s14 = int_to_ptr.hbm [resolvable:$true] %s836_s14 }
  0x12   :  { %369 = vmatpush.bf16.msra.mxu0 %v1054_v1  ;;  %1059 = vmatpush.bf16.msra.mxu1 %v1054_v1  ;;  %v1032_v12 = vld [vmem:[#allocation2 + $0x80] sm:$0xff]  ;;  %v1033_v15 = vld [vmem:[#allocation2 + $0x88] sm:$0xff]  ;;  %v1019_v16 = vld [vmem:[#allocation2 + $0x18] sm:$0xff]  ;;  %s834_s11 = sshll.u32 %s1225_s10, 4  ;;  %s835_s11 = int_to_ptr.vmem [resolvable:$true] %s834_s11 }
  0x13   :  { %1060 = vmatpush.bf16.msra.mxu2 %v1054_v1  ;;  %1061 = vmatpush.bf16.msra.mxu3 %v1054_v1  ;;  %v1027_v17 = vld [vmem:[#allocation2 + $0x58] sm:$0xff]  ;;  %v1034_v18 = vld [vmem:[#allocation2 + $0x90] sm:$0xff]  ;;  %v1040_v19 = vld [vmem:[#allocation2 + $0xc0] sm:$0xff] }
  0x14   :  { %v1020_v20 = vld [vmem:[#allocation2 + $0x20] sm:$0xff]  ;;  %v1035_v22 = vld [vmem:[#allocation2 + $0x98] sm:$0xff]  ;;  %v1041_v23 = vld [vmem:[#allocation2 + $0xc8] sm:$0xff] }
  0x15   :  { %v1028_v21 = vld [vmem:[#allocation2 + $0x60] sm:$0xff]  ;;  %v1021_v24 = vld [vmem:[#allocation2 + $0x28] sm:$0xff]  ;;  %v1042_v27 = vld [vmem:[#allocation2 + $0xd0] sm:$0xff] }
  0x16   :  { %370 = vmatpush.bf16.msra.mxu0 %v1053_v2  ;;  %1062 = vmatpush.bf16.msra.mxu1 %v1053_v2  ;;  %v1029_v25 = vld [vmem:[#allocation2 + $0x68] sm:$0xff]  ;;  %v1036_v26 = vld [vmem:[#allocation2 + $0xa0] sm:$0xff]  ;;  %v1022_v28 = vld [vmem:[#allocation2 + $0x30] sm:$0xff] }
  0x17   :  { %1063 = vmatpush.bf16.msra.mxu2 %v1053_v2  ;;  %1064 = vmatpush.bf16.msra.mxu3 %v1053_v2  ;;  %v1030_v29 = vld [vmem:[#allocation2 + $0x70] sm:$0xff]  ;;  %v1037_v30 = vld [vmem:[#allocation2 + $0xa8] sm:$0xff]  ;;  %v1043_v31 = vld [vmem:[#allocation2 + $0xd8] sm:$0xff] }
  0x18   :  { %v1023_v32 = vld [vmem:[#allocation2 + $0x38] sm:$0xff]  ;;  %v1038_v34 = vld [vmem:[#allocation2 + $0xb0] sm:$0xff]  ;;  %v1044_v35 = vld [vmem:[#allocation2 + $0xe0] sm:$0xff] }
  0x19   :  { %v1031_v33 = vld [vmem:[#allocation2 + $0x78] sm:$0xff]  ;;  %v1045_v39 = vld [vmem:[#allocation2 + $0xe8] sm:$0xff]  ;;  %v1046_v51 = vld [vmem:[#allocation2 + $0xf0] sm:$0xff] }
  0x1a   :  { %371 = vmatpush.bf16.msra.mxu0 %v1052_v3  ;;  %1065 = vmatpush.bf16.msra.mxu1 %v1052_v3  ;;  %v1039_v38 = vld [vmem:[#allocation2 + $0xb8] sm:$0xff] }
  0x1b   :  { %1066 = vmatpush.bf16.msra.mxu2 %v1052_v3  ;;  %1067 = vmatpush.bf16.msra.mxu3 %v1052_v3  ;;  %v1047_v0 = vld [vmem:[#allocation2 + $0xf8] sm:$0xff] }
  0x1e   :  { %372 = vmatpush.bf16.msra.mxu0 %v1051_v4  ;;  %1068 = vmatpush.bf16.msra.mxu1 %v1051_v4 }
  0x1f   :  { %1069 = vmatpush.bf16.msra.mxu2 %v1051_v4  ;;  %1070 = vmatpush.bf16.msra.mxu3 %v1051_v4 }
  0x22   :  { %373 = vmatpush.bf16.msra.mxu0 %v1050_v5  ;;  %1071 = vmatpush.bf16.msra.mxu1 %v1050_v5 }
  0x23   :  { %1072 = vmatpush.bf16.msra.mxu2 %v1050_v5  ;;  %1073 = vmatpush.bf16.msra.mxu3 %v1050_v5 }
  0x26   :  { %374 = vmatpush.bf16.msra.mxu0 %v1049_v6  ;;  %1074 = vmatpush.bf16.msra.mxu1 %v1049_v6 }
  0x27   :  { %1075 = vmatpush.bf16.msra.mxu2 %v1049_v6  ;;  %1076 = vmatpush.bf16.msra.mxu3 %v1049_v6 }
  0x2a   :  { %375 = vmatpush.bf16.msra.mxu0 %v1048_v7  ;;  %1077 = vmatpush.bf16.msra.mxu1 %v1048_v7 }
  0x2b   :  { %1078 = vmatpush.bf16.msra.mxu2 %v1048_v7  ;;  %1079 = vmatpush.bf16.msra.mxu3 %v1048_v7 }
  0x2d   :  { %376 = vmatmul.bf16.vlgmr.msra.gmra.mxu0 %v1016_v8  ;;  %416 = vmatmul.bf16.vlgmr.msra.gmra.mxu1 %v1024_v9 }
  0x2e   :  { %456 = vmatmul.bf16.vlgmr.msra.gmra.mxu2 %v1032_v12  ;;  %496 = vmatmul.bf16.vlgmr.msra.gmra.mxu3 %v1040_v19 }
  0x3d   :  { %381 = vmatmul.bf16.gmra.mxu0 %v1017_v10  ;;  %421 = vmatmul.bf16.gmra.mxu1 %v1025_v11 }
  0x3e   :  { %461 = vmatmul.bf16.gmra.mxu2 %v1033_v15  ;;  %501 = vmatmul.bf16.gmra.mxu3 %v1041_v23 }
  0x4d   :  { %386 = vmatmul.bf16.gmra.mxu0 %v1018_v13  ;;  %426 = vmatmul.bf16.gmra.mxu1 %v1026_v14 }
  0x4e   :  { %466 = vmatmul.bf16.gmra.mxu2 %v1034_v18  ;;  %506 = vmatmul.bf16.gmra.mxu3 %v1042_v27 }
  0x5d   :  { %391 = vmatmul.bf16.gmra.mxu0 %v1019_v16  ;;  %431 = vmatmul.bf16.gmra.mxu1 %v1027_v17 }
  0x5e   :  { %471 = vmatmul.bf16.gmra.mxu2 %v1035_v22  ;;  %511 = vmatmul.bf16.gmra.mxu3 %v1043_v31 }
  0x6d   :  { %396 = vmatmul.bf16.gmra.mxu0 %v1020_v20  ;;  %436 = vmatmul.bf16.gmra.mxu1 %v1028_v21 }
  0x6e   :  { %476 = vmatmul.bf16.gmra.mxu2 %v1036_v26  ;;  %516 = vmatmul.bf16.gmra.mxu3 %v1044_v35 }
  0x7d   :  { %401 = vmatmul.bf16.gmra.mxu0 %v1021_v24  ;;  %441 = vmatmul.bf16.gmra.mxu1 %v1029_v25 }
  0x7e   :  { %481 = vmatmul.bf16.gmra.mxu2 %v1037_v30  ;;  %521 = vmatmul.bf16.gmra.mxu3 %v1045_v39 }
  0x8d   :  { %406 = vmatmul.bf16.gmra.mxu0 %v1022_v28  ;;  %446 = vmatmul.bf16.gmra.mxu1 %v1030_v29 }
  0x8e   :  { %486 = vmatmul.bf16.gmra.mxu2 %v1038_v34  ;;  %526 = vmatmul.bf16.gmra.mxu3 %v1046_v51 }
  0x9d   :  { %411 = vmatmul.bf16.gmra.mxu0 %v1023_v32  ;;  %451 = vmatmul.bf16.gmra.mxu1 %v1031_v33 }
  0x9e   :  { %491 = vmatmul.bf16.gmra.mxu2 %v1039_v38  ;;  %531 = vmatmul.bf16.gmra.mxu3 %v1047_v0 }
  0xaa   :  { %v377_v36 = vpop.f32.mrf.mxu0  ;;  %v1257_v37 = vpop.f32.mrf.mxu1 }
  0xab   :  { %537 = vst [vmem:[#allocation7] sm:$0xff] %v377_v36  ;;  %v670_v42 = vmul.f32 %v377_v36, %v377_v36 }
  0xac   :  { %553 = vst [vmem:[#allocation7 + $0x80] sm:$0xff] %v1257_v37 }
  0xb1   :  { %v1268_v56 = vpop.f32.mrf.mxu2  ;;  %v1298_v10 = vpop.f32.mrf.mxu3 }
  0xb2   :  { %v379_v40 = vpop.f32.mrf.mxu0  ;;  %v1260_v41 = vpop.f32.mrf.mxu1  ;;  %569 = vst [vmem:[#allocation7 + $0x100] sm:$0xff] %v1268_v56 }
  0xb3   :  { %538 = vst [vmem:[#allocation7 + $0x8] sm:$0xff] %v379_v40  ;;  %v601_v43 = vadd.f32 %v379_v40, %v377_v36  ;;  %v671_v44 = vmul.f32 %v379_v40, %v379_v40 }
  0xb4   :  { %554 = vst [vmem:[#allocation7 + $0x88] sm:$0xff] %v1260_v41 }
  0xb5   :  { %v734_v45 = vadd.f32 %v671_v44, %v670_v42  ;;  %585 = vst [vmem:[#allocation7 + $0x180] sm:$0xff] %v1298_v10 }
  0xb9   :  { %v1276_v62 = vpop.f32.mrf.mxu2  ;;  %v1307_v14 = vpop.f32.mrf.mxu3 }
  0xba   :  { %v382_v46 = vpop.f32.mrf.mxu0  ;;  %v1263_v47 = vpop.f32.mrf.mxu1  ;;  %570 = vst [vmem:[#allocation7 + $0x108] sm:$0xff] %v1276_v62 }
  0xbb   :  { %539 = vst [vmem:[#allocation7 + $0x10] sm:$0xff] %v382_v46  ;;  %v602_v48 = vadd.f32 %v601_v43, %v382_v46  ;;  %v672_v49 = vmul.f32 %v382_v46, %v382_v46 }
  0xbc   :  { %555 = vst [vmem:[#allocation7 + $0x90] sm:$0xff] %v1263_v47 }
  0xbd   :  { %v735_v50 = vadd.f32 %v734_v45, %v672_v49  ;;  %586 = vst [vmem:[#allocation7 + $0x188] sm:$0xff] %v1307_v14 }
  0xc1   :  { %v1284_v3 = vpop.f32.mrf.mxu2  ;;  %v1316_v18 = vpop.f32.mrf.mxu3 }
  0xc2   :  { %v384_v52 = vpop.f32.mrf.mxu0  ;;  %v1266_v53 = vpop.f32.mrf.mxu1  ;;  %571 = vst [vmem:[#allocation7 + $0x110] sm:$0xff] %v1284_v3 }
  0xc3   :  { %540 = vst [vmem:[#allocation7 + $0x18] sm:$0xff] %v384_v52  ;;  %v603_v54 = vadd.f32 %v602_v48, %v384_v52  ;;  %v673_v55 = vmul.f32 %v384_v52, %v384_v52 }
  0xc4   :  { %556 = vst [vmem:[#allocation7 + $0x98] sm:$0xff] %v1266_v53 }
  0xc5   :  { %v736_v57 = vadd.f32 %v735_v50, %v673_v55  ;;  %587 = vst [vmem:[#allocation7 + $0x190] sm:$0xff] %v1316_v18 }
  0xc9   :  { %v1290_v6 = vpop.f32.mrf.mxu2  ;;  %v1325_v22 = vpop.f32.mrf.mxu3 }
  0xca   :  { %v387_v58 = vpop.f32.mrf.mxu0  ;;  %v1272_v59 = vpop.f32.mrf.mxu1  ;;  %572 = vst [vmem:[#allocation7 + $0x118] sm:$0xff] %v1290_v6 }
  0xcb   :  { %541 = vst [vmem:[#allocation7 + $0x20] sm:$0xff] %v387_v58  ;;  %v1274_v60 = vadd.f32 %v603_v54, %v387_v58  ;;  %v674_v61 = vmul.f32 %v387_v58, %v387_v58 }
  0xcc   :  { %557 = vst [vmem:[#allocation7 + $0xa0] sm:$0xff] %v1272_v59 }
  0xcd   :  { %v1279_v63 = vadd.f32 %v736_v57, %v674_v61  ;;  %588 = vst [vmem:[#allocation7 + $0x198] sm:$0xff] %v1325_v22 }
  0xd1   :  { %v1296_v9 = vpop.f32.mrf.mxu2  ;;  %v1334_v26 = vpop.f32.mrf.mxu3 }
  0xd2   :  { %v389_v1 = vpop.f32.mrf.mxu0  ;;  %v1282_v2 = vpop.f32.mrf.mxu1  ;;  %573 = vst [vmem:[#allocation7 + $0x120] sm:$0xff] %v1296_v9 }
  0xd3   :  { %542 = vst [vmem:[#allocation7 + $0x28] sm:$0xff] %v389_v1  ;;  %v675_v31 = vmul.f32 %v389_v1, %v389_v1  ;;  %v605_v32 = vadd.f32 %v1274_v60, %v389_v1 }
  0xd4   :  { %558 = vst [vmem:[#allocation7 + $0xa8] sm:$0xff] %v1282_v2 }
  0xd5   :  { %589 = vst [vmem:[#allocation7 + $0x1a0] sm:$0xff] %v1334_v26  ;;  %v738_v34 = vadd.f32 %v1279_v63, %v675_v31 }
  0xd9   :  { %v1305_v13 = vpop.f32.mrf.mxu2  ;;  %v1343_v30 = vpop.f32.mrf.mxu3 }
  0xda   :  { %v392_v4 = vpop.f32.mrf.mxu0  ;;  %v1288_v5 = vpop.f32.mrf.mxu1  ;;  %574 = vst [vmem:[#allocation7 + $0x128] sm:$0xff] %v1305_v13 }
  0xdb   :  { %543 = vst [vmem:[#allocation7 + $0x30] sm:$0xff] %v392_v4  ;;  %v676_v33 = vmul.f32 %v392_v4, %v392_v4  ;;  %v606_v35 = vadd.f32 %v605_v32, %v392_v4 }
  0xdc   :  { %559 = vst [vmem:[#allocation7 + $0xb0] sm:$0xff] %v1288_v5 }
  0xdd   :  { %590 = vst [vmem:[#allocation7 + $0x1a8] sm:$0xff] %v1343_v30  ;;  %v739_v40 = vadd.f32 %v738_v34, %v676_v33 }
  0xe1   :  { %v1314_v17 = vpop.f32.mrf.mxu2  ;;  %v1354_v45 = vpop.f32.mrf.mxu3 }
  0xe2   :  { %v394_v7 = vpop.f32.mrf.mxu0  ;;  %v1294_v8 = vpop.f32.mrf.mxu1  ;;  %575 = vst [vmem:[#allocation7 + $0x130] sm:$0xff] %v1314_v17 }
  0xe3   :  { %544 = vst [vmem:[#allocation7 + $0x38] sm:$0xff] %v394_v7  ;;  %v677_v36 = vmul.f32 %v394_v7, %v394_v7  ;;  %v607_v42 = vadd.f32 %v606_v35, %v394_v7 }
  0xe4   :  { %560 = vst [vmem:[#allocation7 + $0xb8] sm:$0xff] %v1294_v8 }
  0xe5   :  { %v740_v46 = vadd.f32 %v739_v40, %v677_v36  ;;  %591 = vst [vmem:[#allocation7 + $0x1b0] sm:$0xff] %v1354_v45 }
  0xe9   :  { %v1323_v21 = vpop.f32.mrf.mxu2  ;;  %v1363_v4 = vpop.f32.mrf.mxu3 }
  0xea   :  { %v397_v11 = vpop.f32.mrf.mxu0  ;;  %v1303_v12 = vpop.f32.mrf.mxu1  ;;  %576 = vst [vmem:[#allocation7 + $0x138] sm:$0xff] %v1323_v21 }
  0xeb   :  { %545 = vst [vmem:[#allocation7 + $0x40] sm:$0xff] %v397_v11  ;;  %v678_v43 = vmul.f32 %v397_v11, %v397_v11  ;;  %v608_v48 = vadd.f32 %v607_v42, %v397_v11 }
  0xec   :  { %561 = vst [vmem:[#allocation7 + $0xc0] sm:$0xff] %v1303_v12 }
  0xed   :  { %v741_v50 = vadd.f32 %v740_v46, %v678_v43  ;;  %592 = vst [vmem:[#allocation7 + $0x1b8] sm:$0xff] %v1363_v4  ;;  %v686_v46 = vmul.f32 %v1257_v37, %v1257_v37 }
  0xf1   :  { %v1332_v25 = vpop.f32.mrf.mxu2 }
  0xf2   :  { %v399_v15 = vpop.f32.mrf.mxu0  ;;  %v1312_v16 = vpop.f32.mrf.mxu1  ;;  %577 = vst [vmem:[#allocation7 + $0x140] sm:$0xff] %v1332_v25 }
  0xf3   :  { %546 = vst [vmem:[#allocation7 + $0x48] sm:$0xff] %v399_v15  ;;  %v679_v49 = vmul.f32 %v399_v15, %v399_v15  ;;  %v609_v51 = vadd.f32 %v608_v48, %v399_v15 }
  0xf4   :  { %562 = vst [vmem:[#allocation7 + $0xc8] sm:$0xff] %v1312_v16 }
  0xf5   :  { %v742_v54 = vadd.f32 %v741_v50, %v679_v49  ;;  %v687_v49 = vmul.f32 %v1260_v41, %v1260_v41 }
  0xf9   :  { %v1341_v29 = vpop.f32.mrf.mxu2 }
  0xfa   :  { %v402_v19 = vpop.f32.mrf.mxu0  ;;  %v1321_v20 = vpop.f32.mrf.mxu1  ;;  %578 = vst [vmem:[#allocation7 + $0x148] sm:$0xff] %v1341_v29 }
  0xfb   :  { %547 = vst [vmem:[#allocation7 + $0x50] sm:$0xff] %v402_v19  ;;  %v680_v52 = vmul.f32 %v402_v19, %v402_v19  ;;  %v610_v55 = vadd.f32 %v609_v51, %v402_v19 }
  0xfc   :  { %563 = vst [vmem:[#allocation7 + $0xd0] sm:$0xff] %v1321_v20 }
  0xfd   :  { %v743_v61 = vadd.f32 %v742_v54, %v680_v52  ;;  %v688_v52 = vmul.f32 %v1263_v47, %v1263_v47 }
 0x101   :  { %v1352_v44 = vpop.f32.mrf.mxu2 }
 0x102   :  { %v404_v23 = vpop.f32.mrf.mxu0  ;;  %v1330_v24 = vpop.f32.mrf.mxu1  ;;  %579 = vst [vmem:[#allocation7 + $0x150] sm:$0xff] %v1352_v44 }
 0x103   :  { %548 = vst [vmem:[#allocation7 + $0x58] sm:$0xff] %v404_v23  ;;  %v681_v57 = vmul.f32 %v404_v23, %v404_v23  ;;  %v611_v63 = vadd.f32 %v610_v55, %v404_v23 }
 0x104   :  { %564 = vst [vmem:[#allocation7 + $0xd8] sm:$0xff] %v1330_v24 }
 0x105   :  { %v744_v7 = vadd.f32 %v743_v61, %v681_v57 }
 0x109   :  { %v1361_v1 = vpop.f32.mrf.mxu2 }
 0x10a   :  { %v407_v27 = vpop.f32.mrf.mxu0  ;;  %v1339_v28 = vpop.f32.mrf.mxu1  ;;  %580 = vst [vmem:[#allocation7 + $0x158] sm:$0xff] %v1361_v1 }
 0x10b   :  { %549 = vst [vmem:[#allocation7 + $0x60] sm:$0xff] %v407_v27  ;;  %v682_v0 = vmul.f32 %v407_v27, %v407_v27  ;;  %v612_v11 = vadd.f32 %v611_v63, %v407_v27  ;;  %v1372_v27 = vpop.f32.mrf.mxu3 }
 0x10c   :  { %565 = vst [vmem:[#allocation7 + $0xe0] sm:$0xff] %v1339_v28 }
 0x10d   :  { %v745_v19 = vadd.f32 %v744_v7, %v682_v0  ;;  %593 = vst [vmem:[#allocation7 + $0x1c0] sm:$0xff] %v1372_v27 }
 0x111   :  { %v1370_v43 = vpop.f32.mrf.mxu2 }
 0x112   :  { %v409_v38 = vpop.f32.mrf.mxu0  ;;  %v1350_v39 = vpop.f32.mrf.mxu1  ;;  %581 = vst [vmem:[#allocation7 + $0x160] sm:$0xff] %v1370_v43 }
 0x113   :  { %550 = vst [vmem:[#allocation7 + $0x68] sm:$0xff] %v409_v38  ;;  %v683_v15 = vmul.f32 %v409_v38, %v409_v38  ;;  %v613_v31 = vadd.f32 %v612_v11, %v409_v38  ;;  %v1391_v63 = vpop.f32.mrf.mxu3 }
 0x114   :  { %566 = vst [vmem:[#allocation7 + $0xe8] sm:$0xff] %v1350_v39 }
 0x115   :  { %v746_v33 = vadd.f32 %v745_v19, %v683_v15  ;;  %594 = vst [vmem:[#allocation7 + $0x1c8] sm:$0xff] %v1391_v63  ;;  %v692_v15 = vmul.f32 %v1288_v5, %v1288_v5 }
 0x119   :  { %v1389_v61 = vpop.f32.mrf.mxu2 }
 0x11a   :  { %v412_v58 = vpop.f32.mrf.mxu0  ;;  %v1359_v60 = vpop.f32.mrf.mxu1  ;;  %582 = vst [vmem:[#allocation7 + $0x168] sm:$0xff] %v1389_v61 }
 0x11b   :  { %551 = vst [vmem:[#allocation7 + $0x70] sm:$0xff] %v412_v58  ;;  %v684_v32 = vmul.f32 %v412_v58, %v412_v58  ;;  %v614_v23 = vadd.f32 %v613_v31, %v412_v58 }
 0x11c   :  { %567 = vst [vmem:[#allocation7 + $0xf0] sm:$0xff] %v1359_v60 }
 0x11d   :  { %v747_v36 = vadd.f32 %v746_v33, %v684_v32  ;;  %v693_v32 = vmul.f32 %v1294_v8, %v1294_v8 }
 0x122   :  { %v414_v34 = vpop.f32.mrf.mxu0  ;;  %v1368_v35 = vpop.f32.mrf.mxu1 }
 0x123   :  { %552 = vst [vmem:[#allocation7 + $0x78] sm:$0xff] %v414_v34  ;;  %v615_v40 = vadd.f32 %v614_v23, %v414_v34  ;;  %v685_v42 = vmul.f32 %v414_v34, %v414_v34  ;;  %v1407_v23 = vpop.f32.mrf.mxu2  ;;  %v1409_v34 = vpop.f32.mrf.mxu3 }
 0x124   :  { %568 = vst [vmem:[#allocation7 + $0xf8] sm:$0xff] %v1368_v35 }
 0x125   :  { %v616_v38 = vadd.f32 %v615_v40, %v1257_v37  ;;  %v748_v48 = vadd.f32 %v747_v36, %v685_v42  ;;  %v689_v37 = vmul.f32 %v1266_v53, %v1266_v53  ;;  %583 = vst [vmem:[#allocation7 + $0x170] sm:$0xff] %v1407_v23 }
 0x126   :  { %595 = vst [vmem:[#allocation7 + $0x1d0] sm:$0xff] %v1409_v34 }
 0x127   :  { %v617_v50 = vadd.f32 %v616_v38, %v1260_v41  ;;  %v749_v51 = vadd.f32 %v748_v48, %v686_v46  ;;  %v690_v41 = vmul.f32 %v1272_v59, %v1272_v59  ;;  %v696_v46 = vmul.f32 %v1321_v20, %v1321_v20 }
 0x129   :  { %v618_v54 = vadd.f32 %v617_v50, %v1263_v47  ;;  %v750_v55 = vadd.f32 %v749_v51, %v687_v49  ;;  %v691_v47 = vmul.f32 %v1282_v2, %v1282_v2  ;;  %v697_v49 = vmul.f32 %v1330_v24, %v1330_v24 }
 0x12b   :  { %v619_v57 = vadd.f32 %v618_v54, %v1266_v53  ;;  %v751_v58 = vadd.f32 %v750_v55, %v688_v52  ;;  %v1425_v51 = vpop.f32.mrf.mxu2  ;;  %v1427_v52 = vpop.f32.mrf.mxu3  ;;  %v698_v54 = vmul.f32 %v1339_v28, %v1339_v28 }
 0x12c   :  { %584 = vst [vmem:[#allocation7 + $0x178] sm:$0xff] %v1425_v51 }
 0x12d   :  { %v620_v0 = vadd.f32 %v619_v57, %v1272_v59  ;;  %v752_v7 = vadd.f32 %v751_v58, %v689_v37  ;;  %596 = vst [vmem:[#allocation7 + $0x1d8] sm:$0xff] %v1427_v52 }
 0x12f   :  { %v621_v53 = vadd.f32 %v620_v0, %v1282_v2  ;;  %v753_v11 = vadd.f32 %v752_v7, %v690_v41  ;;  %v694_v2 = vmul.f32 %v1303_v12, %v1303_v12  ;;  %v700_v41 = vmul.f32 %v1359_v60, %v1359_v60 }
 0x131   :  { %v754_v19 = vadd.f32 %v753_v11, %v691_v47  ;;  %v622_v31 = vadd.f32 %v621_v53, %v1288_v5  ;;  %v695_v5 = vmul.f32 %v1312_v16, %v1312_v16  ;;  %v702_v53 = vmul.f32 %v1268_v56, %v1268_v56 }
 0x133   :  { %v623_v59 = vadd.f32 %v622_v31, %v1294_v8  ;;  %v755_v33 = vadd.f32 %v754_v19, %v692_v15  ;;  %v1443_v47 = vpop.f32.mrf.mxu3  ;;  %v703_v15 = vmul.f32 %v1276_v62, %v1276_v62  ;;  %v704_v31 = vmul.f32 %v1284_v3, %v1284_v3 }
 0x134   :  { %597 = vst [vmem:[#allocation7 + $0x1e0] sm:$0xff] %v1443_v47 }
 0x135   :  { %v624_v36 = vadd.f32 %v623_v59, %v1303_v12  ;;  %v756_v40 = vadd.f32 %v755_v33, %v693_v32  ;;  %v705_v59 = vmul.f32 %v1290_v6, %v1290_v6 }
 0x137   :  { %v625_v8 = vadd.f32 %v624_v36, %v1312_v16  ;;  %v757_v42 = vadd.f32 %v756_v40, %v694_v2 }
 0x139   :  { %v626_v38 = vadd.f32 %v625_v8, %v1321_v20  ;;  %v758_v48 = vadd.f32 %v757_v42, %v695_v5 }
 0x13b   :  { %v627_v12 = vadd.f32 %v626_v38, %v1330_v24  ;;  %v759_v50 = vadd.f32 %v758_v48, %v696_v46  ;;  %v699_v24 = vmul.f32 %v1350_v39, %v1350_v39  ;;  %v709_v38 = vmul.f32 %v1323_v21, %v1323_v21 }
 0x13d   :  { %v628_v16 = vadd.f32 %v627_v12, %v1339_v28  ;;  %v760_v55 = vadd.f32 %v759_v50, %v697_v49  ;;  %v701_v28 = vmul.f32 %v1368_v35, %v1368_v35 }
 0x13f   :  { %v761_v20 = vadd.f32 %v760_v55, %v698_v54  ;;  %v629_v37 = vadd.f32 %v628_v16, %v1350_v39  ;;  %v712_v54 = vmul.f32 %v1352_v44, %v1352_v44 }
 0x141   :  { %v762_v57 = vadd.f32 %v761_v20, %v699_v24  ;;  %v630_v58 = vadd.f32 %v629_v37, %v1359_v60  ;;  %v713_v37 = vmul.f32 %v1361_v1, %v1361_v1 }
 0x143   :  { %v763_v0 = vadd.f32 %v762_v57, %v700_v41  ;;  %v631_v7 = vadd.f32 %v630_v58, %v1368_v35  ;;  %v714_v41 = vmul.f32 %v1370_v43, %v1370_v43 }
 0x145   :  { %v632_v39 = vadd.f32 %v631_v7, %v1268_v56  ;;  %v764_v11 = vadd.f32 %v763_v0, %v701_v28  ;;  %v1458_v56 = vpop.f32.mrf.mxu3 }
 0x146   :  { %598 = vst [vmem:[#allocation7 + $0x1e8] sm:$0xff] %v1458_v56 }
 0x147   :  { %v633_v60 = vadd.f32 %v632_v39, %v1276_v62  ;;  %v765_v19 = vadd.f32 %v764_v11, %v702_v53  ;;  %v706_v62 = vmul.f32 %v1296_v9, %v1296_v9  ;;  %v716_v53 = vmul.f32 %v1407_v23, %v1407_v23 }
 0x149   :  { %v634_v35 = vadd.f32 %v633_v60, %v1284_v3  ;;  %v766_v32 = vadd.f32 %v765_v19, %v703_v15  ;;  %v707_v3 = vmul.f32 %v1305_v13, %v1305_v13  ;;  %v718_v15 = vmul.f32 %v1298_v10, %v1298_v10 }
 0x14b   :  { %v635_v33 = vadd.f32 %v634_v35, %v1290_v6  ;;  %v767_v2 = vadd.f32 %v766_v32, %v704_v31  ;;  %v708_v6 = vmul.f32 %v1314_v17, %v1314_v17 }
 0x14d   :  { %v636_v36 = vadd.f32 %v635_v33, %v1296_v9  ;;  %v768_v40 = vadd.f32 %v767_v2, %v705_v59  ;;  %v1473_v9 = vpop.f32.mrf.mxu3 }
 0x14e   :  { %599 = vst [vmem:[#allocation7 + $0x1f0] sm:$0xff] %v1473_v9 }
 0x14f   :  { %v637_v5 = vadd.f32 %v636_v36, %v1305_v13  ;;  %v769_v8 = vadd.f32 %v768_v40, %v706_v62  ;;  %v710_v13 = vmul.f32 %v1332_v25, %v1332_v25 }
 0x151   :  { %v770_v42 = vadd.f32 %v769_v8, %v707_v3  ;;  %v638_v46 = vadd.f32 %v637_v5, %v1314_v17  ;;  %v711_v17 = vmul.f32 %v1341_v29, %v1341_v29 }
 0x153   :  { %v639_v48 = vadd.f32 %v638_v46, %v1323_v21  ;;  %v771_v49 = vadd.f32 %v770_v42, %v708_v6 }
 0x155   :  { %v640_v12 = vadd.f32 %v639_v48, %v1332_v25  ;;  %v772_v50 = vadd.f32 %v771_v49, %v709_v38  ;;  %v1491_v57 = vpop.f32.mrf.mxu3 }
 0x156   :  { %600 = vst [vmem:[#allocation7 + $0x1f8] sm:$0xff] %v1491_v57 }
 0x157   :  { %v641_v21 = vadd.f32 %v640_v12, %v1341_v29  ;;  %v773_v16 = vadd.f32 %v772_v50, %v710_v13  ;;  %817 = dma.vmem_to_hbm [thread:$0]  %s810_s1, 8192, %s812_s29, [#allocation4], %s1222_s2, %s1222_s2, %s1223_s30   ;;  %v729_v50 = vmul.f32 %v1427_v52, %v1427_v52 }
 0x159   :  { %v642_v55 = vadd.f32 %v641_v21, %v1352_v44  ;;  %v774_v20 = vadd.f32 %v773_v16, %v711_v17  ;;  %v730_v16 = vmul.f32 %v1443_v47, %v1443_v47 }
 0x15b   :  { %v643_v25 = vadd.f32 %v642_v55, %v1361_v1  ;;  %v775_v24 = vadd.f32 %v774_v20, %v712_v54  ;;  %v715_v1 = vmul.f32 %v1389_v61, %v1389_v61  ;;  %v731_v55 = vmul.f32 %v1458_v56, %v1458_v56 }
 0x15d   :  { %v776_v29 = vadd.f32 %v775_v24, %v713_v37  ;;  %v644_v58 = vadd.f32 %v643_v25, %v1370_v43  ;;  %v717_v43 = vmul.f32 %v1425_v51, %v1425_v51  ;;  %v732_v25 = vmul.f32 %v1473_v9, %v1473_v9 }
 0x15e   :  { %v733_v24 = vmul.f32 %v1491_v57, %v1491_v57 }
 0x15f   :  { %v777_v44 = vadd.f32 %v776_v29, %v714_v41  ;;  %v645_v0 = vadd.f32 %v644_v58, %v1389_v61  ;;  %v719_v61 = vmul.f32 %v1307_v14, %v1307_v14 }
 0x161   :  { %v778_v7 = vadd.f32 %v777_v44, %v715_v1  ;;  %v646_v28 = vadd.f32 %v645_v0, %v1407_v23  ;;  %v720_v23 = vmul.f32 %v1316_v18, %v1316_v18 }
 0x163   :  { %v779_v39 = vadd.f32 %v778_v7, %v716_v53  ;;  %v647_v11 = vadd.f32 %v646_v28, %v1425_v51  ;;  %v721_v51 = vmul.f32 %v1325_v22, %v1325_v22 }
 0x165   :  { %v648_v60 = vadd.f32 %v647_v11, %v1298_v10  ;;  %v780_v19 = vadd.f32 %v779_v39, %v717_v43  ;;  %v722_v10 = vmul.f32 %v1334_v26, %v1334_v26 }
 0x167   :  { %v649_v31 = vadd.f32 %v648_v60, %v1307_v14  ;;  %v781_v35 = vadd.f32 %v780_v19, %v718_v15  ;;  %v723_v14 = vmul.f32 %v1343_v30, %v1343_v30 }
 0x169   :  { %v650_v32 = vadd.f32 %v649_v31, %v1316_v18  ;;  %v782_v59 = vadd.f32 %v781_v35, %v719_v61  ;;  %v724_v18 = vmul.f32 %v1354_v45, %v1354_v45 }
 0x16b   :  { %v651_v33 = vadd.f32 %v650_v32, %v1325_v22  ;;  %v783_v2 = vadd.f32 %v782_v59, %v720_v23  ;;  %v725_v22 = vmul.f32 %v1363_v4, %v1363_v4 }
 0x16d   :  { %v652_v62 = vadd.f32 %v651_v33, %v1334_v26  ;;  %v784_v36 = vadd.f32 %v783_v2, %v721_v51  ;;  %v726_v26 = vmul.f32 %v1372_v27, %v1372_v27 }
 0x16f   :  { %v653_v40 = vadd.f32 %v652_v62, %v1343_v30  ;;  %v785_v3 = vadd.f32 %v784_v36, %v722_v10  ;;  %v727_v30 = vmul.f32 %v1391_v63, %v1391_v63 }
 0x171   :  { %v786_v5 = vadd.f32 %v785_v3, %v723_v14  ;;  %v654_v8 = vadd.f32 %v653_v40, %v1354_v45  ;;  %v728_v45 = vmul.f32 %v1409_v34, %v1409_v34 }
 0x173   :  { %v655_v6 = vadd.f32 %v654_v8, %v1363_v4  ;;  %v787_v42 = vadd.f32 %v786_v5, %v724_v18 }
 0x175   :  { %v656_v46 = vadd.f32 %v655_v6, %v1372_v27  ;;  %v788_v38 = vadd.f32 %v787_v42, %v725_v22 }
 0x177   :  { %v657_v48 = vadd.f32 %v656_v46, %v1391_v63  ;;  %v789_v49 = vadd.f32 %v788_v38, %v726_v26 }
 0x179   :  { %v658_v13 = vadd.f32 %v657_v48, %v1409_v34  ;;  %v790_v12 = vadd.f32 %v789_v49, %v727_v30 }
 0x17b   :  { %v659_v4 = vadd.f32 %v658_v13, %v1427_v52  ;;  %v791_v17 = vadd.f32 %v790_v12, %v728_v45 }
 0x17d   :  { %v792_v27 = vadd.f32 %v791_v17, %v729_v50  ;;  %v660_v21 = vadd.f32 %v659_v4, %v1443_v47 }
 0x17f   :  { %v793_v63 = vadd.f32 %v792_v27, %v730_v16  ;;  %v661_v54 = vadd.f32 %v660_v21, %v1458_v56 }
 0x181   :  { %v794_v34 = vadd.f32 %v793_v63, %v731_v55  ;;  %v662_v20 = vadd.f32 %v661_v54, %v1473_v9 }
 0x183   :  { %v795_v52 = vadd.f32 %v794_v34, %v732_v25  ;;  %v663_v37 = vadd.f32 %v662_v20, %v1491_v57 }
 0x185   :  { %v664_v29 = vrot.slane %v663_v37, 4  ;;  %v796_v47 = vadd.f32 %v795_v52, %v733_v24 }
 0x187   :  { %v665_v58 = vadd.f32 %v664_v29, %v663_v37  ;;  %v797_v41 = vrot.slane %v796_v47, 4 }
 0x189   :  { %v666_v44 = vrot.slane %v665_v58, 2  ;;  %v798_v0 = vadd.f32 %v797_v41, %v796_v47 }
 0x18b   :  { %v667_v1 = vadd.f32 %v666_v44, %v665_v58  ;;  %v799_v56 = vrot.slane %v798_v0, 2 }
 0x18d   :  { %v800_v9 = vadd.f32 %v799_v56, %v798_v0  ;;  %v668_v7 = vrot.slane %v667_v1, 1 }
 0x18f   :  { %v669_v57 = vadd.f32 %v668_v7, %v667_v1  ;;  %v801_v28 = vrot.slane %v800_v9, 1 }
 0x191   :  { %803 = vst [vmem:[#allocation8] sm:$0xff] %v669_v57  ;;  %v802_v53 = vadd.f32 %v801_v28, %v800_v9 }
 0x192   :  { %828 = dma.vmem_to_hbm [thread:$0]  %s824_s6, 128, %s826_s9, [#allocation9]  }
 0x193   :  { %804 = vst [vmem:[#allocation10] sm:$0xff] %v802_v53 }
 0x194   :  { %839 = dma.vmem_to_hbm [thread:$0]  %s835_s11, 128, %s837_s14, [#allocation9]  }
 0x195   :  { %1213 = dma.done.wait [#allocation4], 8192  }
 0x196   :  { %1214 = vsyncadd [#allocation4], 4294959104 }
 0x197   :  { %1215 = dma.done.wait [#allocation9], 256  }
 0x198   :  { %1216 = vsyncadd [#allocation9], 4294967040 }
 0x199   :  { %852 = vsyncpa [#allocation3], 1 }
 0x19a   :  { %853 = vsyncpa [#allocation6], 1 }
 0x19b   :  { %854 = vsyncpa [#allocation4], 1 }
 0x19c   :  { %855 = vsyncpa [#allocation9], 1 }

</bundles_post_ra>
